<compile_context>
chip_gen: v5e
topology: v5e:2x2
jax: 0.10.0
libtpu: 0.0.40
codegen_flags: <defaults>
</compile_context>

<pallas_src>
import math
import jax
import jax.numpy as jnp
from jax.experimental import pallas as pl
from jax.experimental.pallas import tpu as pltpu

# ---- synthetic "LlamaConfig" (small) ----
B, T = 2, 8            # batch, sequence
H = 32                 # config.hidden_size
QK = 32                # config.query_key_dim
NH = 4                 # config.num_attention_heads
VF = 2                 # config.v_factor
E = H * VF             # expansion_dim = 64
KD = QK // NH          # key_dim per head = 8
HD = E // NH           # head_dim per head = 16
EPS = 1e-6             # rms_norm_eps
SCALING = KD ** -0.5
PROJ = 2 * QK + 2 * E  # fused projection width:  q | k | v | gate      = 192
FUSED = H + QK + E     # fused output slab:       y | k_curr | v_curr   = 128


def _silu(z):
    return z * jax.nn.sigmoid(z)


def _rms(z, w, eps=EPS):
    var = jnp.mean(z * z, axis=-1, keepdims=True)
    return z * jax.lax.rsqrt(var + eps) * w


def decoder_layer_kernel(x_ref, wf_ref, ow_ref, c_ref, out_ref):
    BB, Tb, Hb = x_ref.shape          # batch-block, seq, hidden (static)
    S = BB * Tb                       # folded row count (batch folded into sublanes)
    NS = NH * S                       # block-diagonal column count
    W2 = 2 * QK

    # ---- unpack the packed f32 constants slab (static row offsets) ----
    r = 0
    sin2 = c_ref[r:r + S, :W2]; r += S           # (S, 2QK)   k-half carries *SCALING
    cos2 = c_ref[r:r + S, :W2]; r += S           # (S, 2QK)
    decay = c_ref[r:r + S, :NS]; r += S          # (S, NH*S)  causal*batch-block*gamma^(i-j)
    rot2 = c_ref[r:r + W2, :W2]; r += W2         # (2QK, 2QK) rotate_every_two as matmul
    kmask = c_ref[r:r + NS, :QK]; r += NS        # (NH*S, QK) head block-diagonal 0/1
    vmask = c_ref[r:r + NS, :E]; r += NS         # (NH*S, E)
    psum = c_ref[r:r + NS, :NS]; r += NS         # (NH*S, NH*S) per-head block-ones
    pgn = c_ref[r:r + E, :E]                     # (E, E)       per-head block-ones

    x = x_ref[...].reshape(S, Hb)                # (S, H) residual rows, f32

    # 1) input RMSNorm (weight folded into wf); stats stay in f32 (v5e-safe)
    xn = x * jax.lax.rsqrt(jnp.mean(x * x, axis=-1, keepdims=True) + EPS)

    # 2) fused q|k|v|gate projection: ONE bf16 MXU matmul (f32 accumulate) + one SiLU
    proj = jnp.dot(xn.astype(jnp.bfloat16), wf_ref[...],
                   preferred_element_type=jnp.float32)            # (S, 192)
    proj = _silu(proj)
    qk = proj[:, :W2]                                             # (S, 64)  [q | k]
    v = proj[:, W2:W2 + E]                                        # (S, 64)  == v_curr
    gate = proj[:, W2 + E:]                                       # (S, 64)
    k_curr = qk[:, QK:] * SCALING                                 # (S, 32)

    # 3) xPos rotation for q and k in one shot: rotate_every_two as one signed
    #    pairwise-swap matmul (could also be 2x pltpu.roll + parity select).
    #    The k-half of sin2/cos2 already carries the key_dim**-0.5 scaling.
    qk_rot = qk * cos2 + jnp.dot(qk, rot2, preferred_element_type=jnp.float32) * sin2
    qr = qk_rot[:, :QK]                                           # (S, 32)
    kr = qk_rot[:, QK:]                                           # (S, 32) pre-scaled

    # 4) block-diagonal retention: heads stay in lanes; two K=QK / N=NS|E matmuls.
    k_bd = jnp.concatenate([kr] * NH, axis=0) * kmask             # (NH*S, QK)
    v_bd = jnp.concatenate([v] * NH, axis=0) * vmask              # (NH*S, E)
    scores = jax.lax.dot_general(qr, k_bd, (((1,), (1,)), ((), ())),
                                 preferred_element_type=jnp.float32)   # (S, NH*S)
    scores = scores * decay
    # per-head |.|-row-sum, broadcast back across each head block via a block-sum matmul
    denom = jnp.dot(jnp.abs(scores), psum, preferred_element_type=jnp.float32)
    denom = jnp.clip(denom, 1.0, 50000.0)
    qkn = scores * pl.reciprocal(denom, approx=True)
    o = jnp.dot(qkn, v_bd, preferred_element_type=jnp.float32)    # (S, E) heads in lanes

    # 5) per-head group RMSNorm via block-sum matmul (weight folded into ow),
    #    gate, output projection (bf16 operands, f32 acc), residual add.
    msq = jnp.dot(o * o, pgn, preferred_element_type=jnp.float32) * (1.0 / HD)
    o_n = o * jax.lax.rsqrt(msq + EPS)
    y = x + jnp.dot((o_n * gate).astype(jnp.bfloat16), ow_ref[...],
                    preferred_element_type=jnp.float32)           # (S, H)

    # 6) single lane-dense 128-lane output slab: [ y | k_curr | v_curr ]
    out_ref[...] = jnp.concatenate([y, k_curr, v], axis=-1).reshape(out_ref.shape)


def _tensorcores_per_device():
    """2 for chips whose TensorCores are fed by 'parallel' grid axes (v7x, v4/v5p
    megacore); 1 for single-TC v5e/v6e.  Unknown chips default to 1 (fold batch)."""
    try:
        kind = jax.devices()[0].device_kind.lower()
    except Exception:
        return 1
    return 2 if any(tag in kind for tag in ("v7", "7x", "v4", "v5p")) else 1


def _build_constants(BB, Tx, sin, cos, gammas):
    """One packed f32 constants slab of width max(2*QK, NH*S, E)."""
    S = BB * Tx
    NS = NH * S
    W = max(2 * QK, NS, E)

    # rotate_every_two over the fused [q|k] width as one signed pairwise-swap matrix
    rot2 = jnp.zeros((2 * QK, 2 * QK), jnp.float32)
    p = jnp.arange(QK)
    rot2 = rot2.at[2 * p + 1, 2 * p].set(-1.0)
    rot2 = rot2.at[2 * p, 2 * p + 1].set(1.0)

    # sin/cos tiled over heads, over the q|k halves and over the folded batch rows;
    # the k scaling (key_dim**-0.5) is folded into the k half (theta_shift is linear).
    scale_row = jnp.concatenate([jnp.ones((QK,), jnp.float32),
                                 jnp.full((QK,), SCALING, jnp.float32)])
    sin2 = jnp.tile(jnp.tile(sin, (1, 2 * NH)), (BB, 1)) * scale_row   # (S, 2QK)
    cos2 = jnp.tile(jnp.tile(cos, (1, 2 * NH)), (BB, 1)) * scale_row   # (S, 2QK)

    # decay mask (S, NH*S): causal, block-diagonal over the folded batch, gamma_h^(i-j)
    ii = jnp.arange(S)[:, None]
    jj = jnp.arange(NS)[None, :] % S
    hh = jnp.arange(NS)[None, :] // S
    valid = (ii >= jj) & ((ii // Tx) == (jj // Tx))
    decay = jnp.where(valid, gammas[hh] ** (ii - jj).astype(jnp.float32), 0.0)

    # head block-diagonal 0/1 masks and per-head block-sum matrices
    hrow = jnp.arange(NS)[:, None] // S
    kmask = (jnp.arange(QK)[None, :] // KD == hrow).astype(jnp.float32)   # (NS, QK)
    vmask = (jnp.arange(E)[None, :] // HD == hrow).astype(jnp.float32)    # (NS, E)
    psum = (hrow == jnp.arange(NS)[None, :] // S).astype(jnp.float32)     # (NS, NS)
    eh = jnp.arange(E) // HD
    pgn = (eh[:, None] == eh[None, :]).astype(jnp.float32)                # (E, E)

    def padw(a):
        return jnp.pad(a, ((0, 0), (0, W - a.shape[1])))

    return jnp.concatenate(
        [padw(a) for a in (sin2, cos2, decay, rot2, kmask, vmask, psum, pgn)],
        axis=0).astype(jnp.float32)


def llama_decoder_layer(x, ln_w, qw_t, kw_t, hw_t, ow_t, gn_w, sin, cos, gammas,
                        batch_block=None):
    """Returns (hidden_states_out, k_curr, v_curr)."""
    Bx, Tx, Hx = x.shape
    if batch_block is None:
        # Rows-per-step driven (perf review): only split across TensorCores when each
        # grid step would see >=128 rows; otherwise fold the whole batch into one step
        # (per-step overhead dominates at S=8..16).
        split = _tensorcores_per_device() >= 2 and Tx >= 128
        batch_block = 1 if split else Bx
    BB = max(1, min(Bx, batch_block))
    assert Bx % BB == 0

    # fused projection weight [q | k | v | gate] -> (H, 192), input_layernorm folded,
    # bf16 storage (halves weight DMA; matmul runs as a single bf16 MXU pass).
    wf = jnp.concatenate([qw_t, kw_t, hw_t], axis=1)
    wf = (ln_w.reshape(Hx, 1) * wf).astype(jnp.bfloat16)
    # to_out weight with the per-head group_norm weight folded in (diagonal scaling
    # commutes with the elementwise gate), bf16 storage.
    ow = (jnp.tile(gn_w.reshape(-1), NH)[:, None] * ow_t).astype(jnp.bfloat16)

    consts = _build_constants(BB, Tx, sin, cos, gammas)
    R, W = consts.shape

    fused = pl.pallas_call(
        decoder_layer_kernel,
        out_shape=jax.ShapeDtypeStruct((Bx, Tx, FUSED), jnp.float32),
        grid_spec=pltpu.PrefetchScalarGridSpec(
            num_scalar_prefetch=0,
            grid=(Bx // BB,),
            in_specs=[
                pl.BlockSpec((BB, Tx, Hx), lambda b: (b, 0, 0)),   # hidden_states
                pl.BlockSpec((Hx, PROJ), lambda b: (0, 0)),        # fused proj (bf16)
                pl.BlockSpec((E, Hx), lambda b: (0, 0)),           # to_out (bf16)
                pl.BlockSpec((R, W), lambda b: (0, 0)),            # packed constants
            ],
            out_specs=pl.BlockSpec((BB, Tx, FUSED), lambda b: (b, 0, 0)),
        ),
        compiler_params=pltpu.CompilerParams(dimension_semantics=("parallel",)),
    )(x, wf, ow, consts)

    y = fused[..., :H]
    k_curr = fused[..., H:H + QK]
    v_curr = fused[..., H + QK:]
    return y, k_curr, v_curr


# ------------------------- pure-JAX reference -------------------------
def rotate_every_two_ref(x):
    x1 = x[..., ::2]
    x2 = x[..., 1::2]
    return jnp.stack([-x2, x1], axis=-1).reshape(x.shape)


def reference(x, ln_w, qw_t, kw_t, hw_t, ow_t, gn_w, sin, cos, gammas):
    hp = jax.lax.Precision.HIGHEST
    bsz, tgt, _ = x.shape
    xn = _rms(x, ln_w.reshape(-1))
    q = _silu(jnp.einsum('bth,hq->btq', xn, qw_t, precision=hp))
    k = _silu(jnp.einsum('bth,hq->btq', xn, kw_t, precision=hp)) * SCALING
    hg = _silu(jnp.einsum('bth,he->bte', xn, hw_t, precision=hp))
    v, gate = hg[..., :E], hg[..., E:]
    qh = q.reshape(bsz, tgt, NH, KD).transpose(0, 2, 1, 3)
    kh = k.reshape(bsz, tgt, NH, KD).transpose(0, 2, 1, 3)
    qr = qh * cos + rotate_every_two_ref(qh) * sin
    kr = kh * cos + rotate_every_two_ref(kh) * sin
    vr = v.reshape(bsz, tgt, NH, HD).transpose(0, 2, 1, 3)
    ii = jnp.arange(tgt)[:, None]
    jj = jnp.arange(tgt)[None, :]
    diff = (ii - jj).astype(jnp.float32)
    causal = (ii >= jj).astype(jnp.float32)
    mask = (gammas[:, None, None] ** diff[None]) * causal[None]     # (NH, T, T)
    qk = jnp.einsum('bhid,bhjd->bhij', qr, kr, precision=hp) * mask
    denom = jnp.clip(jnp.sum(jnp.abs(qk), axis=-1, keepdims=True), 1.0, 50000.0)
    qk = qk / denom
    o = jnp.einsum('bhij,bhjd->bhid', qk, vr, precision=hp).transpose(0, 2, 1, 3)
    o = _rms(o, gn_w.reshape(-1))
    o = o.reshape(bsz, tgt, E) * gate
    o = jnp.einsum('bte,eh->bth', o, ow_t, precision=hp)
    return x + o, k, v


# ------------------------- deterministic params -------------------------
def xavier_uniform(key, shape, gain):
    fan_out, fan_in = shape
    bound = gain * math.sqrt(6.0 / (fan_in + fan_out))
    return jax.random.uniform(key, shape, jnp.float32, -bound, bound)


if __name__ == "__main__":
    key = jax.random.PRNGKey(0)
    keys = jax.random.split(key, 8)

    x = jax.random.normal(keys[0], (B, T, H), jnp.float32)

    g = 2 ** (-2.5)
    q_w = xavier_uniform(keys[1], (QK, H), g)          # torch layout: (out, in)
    k_w = xavier_uniform(keys[2], (QK, H), g)
    hid_w = xavier_uniform(keys[3], (2 * E, H), g)
    out_w = xavier_uniform(keys[4], (H, E), 2 ** (-1))
    ln_w = jnp.ones((1, H), jnp.float32)
    gn_w = jnp.ones((1, HD), jnp.float32)

    # rel_pos: (sin, cos) rotary tables (pairwise-repeated) and per-head decay gammas
    pos = jnp.arange(T, dtype=jnp.float32)[:, None]
    inv_freq = 1.0 / (10000.0 ** (jnp.arange(0, KD, 2, dtype=jnp.float32) / KD))
    ang = jnp.repeat(pos * inv_freq[None, :], 2, axis=-1)             # (T, KD)
    sin, cos = jnp.sin(ang), jnp.cos(ang)
    gammas = 1.0 - 2.0 ** (-5.0 - jnp.arange(NH, dtype=jnp.float32))  # (NH,)

    # kernel takes weights pre-transposed to (in, out)
    qw_t, kw_t, hw_t, ow_t = q_w.T, k_w.T, hid_w.T, out_w.T

    y_ref, k_ref, v_ref = reference(x, ln_w, qw_t, kw_t, hw_t, ow_t, gn_w,
                                    sin, cos, gammas)

    # bf16 weight storage + bf16 operands on the two weight matmuls (per perf review)
    # compared against an f32 HIGHEST-precision reference => tolerance sized for a
    # single bf16 MXU pass (see review correctness note); outputs stay f32.
    ATOL = RTOL = 4e-3

    # Run the auto-selected batch tiling plus both explicit modes
    # (BB=B single folded grid step, BB=1 one batch element per step).
    for bb in (None, B, 1):
        y, k_curr, v_curr = llama_decoder_layer(
            x, ln_w, qw_t, kw_t, hw_t, ow_t, gn_w, sin, cos, gammas,
            batch_block=bb)
        jax.block_until_ready((y, k_curr, v_curr))
        for got, ref, name in ((y, y_ref, "y"), (k_curr, k_ref, "k_curr"),
                               (v_curr, v_ref, "v_curr")):
            err = float(jnp.max(jnp.abs(got - ref)))
            assert jnp.allclose(got, ref, atol=ATOL, rtol=RTOL), (name, bb, err)

    print("KERNEL_OK")
</pallas_src>

<mosaic_0001>
module attributes {stable_mosaic.version = 11 : i64} {
  func.func @decoder_layer_kernel(%arg0: i32, %arg1: memref<2x8x32xf32, #tpu.memory_space<vmem>>, %arg2: memref<32x192xbf16, #tpu.memory_space<vmem>>, %arg3: memref<64x32xbf16, #tpu.memory_space<vmem>>, %arg4: memref<368x64xf32, #tpu.memory_space<vmem>>, %arg5: memref<2x8x128xf32, #tpu.memory_space<vmem>>) attributes {dimension_semantics = [#tpu.dimension_semantics<parallel>], iteration_bounds = array<i64: 1>, scalar_prefetch = 0 : i64, scratch_operands = 0 : i64, tpu.core_type = #tpu.core_type<tc>, window_params = [{transform_indices = @transform_0, window_bounds = array<i64: 2, 8, 32>}, {pipeline_mode = #tpu.pipeline_mode<synchronous>, transform_indices = @transform_1, window_bounds = array<i64: 32, 192>}, {pipeline_mode = #tpu.pipeline_mode<synchronous>, transform_indices = @transform_2, window_bounds = array<i64: 64, 32>}, {pipeline_mode = #tpu.pipeline_mode<synchronous>, transform_indices = @transform_3, window_bounds = array<i64: 368, 64>}, {transform_indices = @transform_4, window_bounds = array<i64: 2, 8, 128>}]} {
    %c0 = arith.constant 0 : index
    %c0_0 = arith.constant 0 : index
    %0 = vector.load %arg4[%c0, %c0_0] : memref<368x64xf32, #tpu.memory_space<vmem>>, vector<16x64xf32>
    %c16 = arith.constant 16 : index
    %c0_1 = arith.constant 0 : index
    %1 = vector.load %arg4[%c16, %c0_1] : memref<368x64xf32, #tpu.memory_space<vmem>>, vector<16x64xf32>
    %c32 = arith.constant 32 : index
    %c0_2 = arith.constant 0 : index
    %2 = vector.load %arg4[%c32, %c0_2] : memref<368x64xf32, #tpu.memory_space<vmem>>, vector<16x64xf32>
    %c48 = arith.constant 48 : index
    %c0_3 = arith.constant 0 : index
    %3 = vector.load %arg4[%c48, %c0_3] : memref<368x64xf32, #tpu.memory_space<vmem>>, vector<64x64xf32>
    %c112 = arith.constant 112 : index
    %c0_4 = arith.constant 0 : index
    %4 = vector.load %arg4[%c112, %c0_4] : memref<368x64xf32, #tpu.memory_space<vmem>>, vector<64x32xf32>
    %c176 = arith.constant 176 : index
    %c0_5 = arith.constant 0 : index
    %5 = vector.load %arg4[%c176, %c0_5] : memref<368x64xf32, #tpu.memory_space<vmem>>, vector<64x64xf32>
    %c240 = arith.constant 240 : index
    %c0_6 = arith.constant 0 : index
    %6 = vector.load %arg4[%c240, %c0_6] : memref<368x64xf32, #tpu.memory_space<vmem>>, vector<64x64xf32>
    %c304 = arith.constant 304 : index
    %c0_7 = arith.constant 0 : index
    %7 = vector.load %arg4[%c304, %c0_7] : memref<368x64xf32, #tpu.memory_space<vmem>>, vector<64x64xf32>
    %c0_8 = arith.constant 0 : index
    %c0_9 = arith.constant 0 : index
    %c0_10 = arith.constant 0 : index
    %8 = vector.load %arg1[%c0_8, %c0_9, %c0_10] : memref<2x8x32xf32, #tpu.memory_space<vmem>>, vector<2x8x32xf32>
    %9 = vector.shape_cast %8 : vector<2x8x32xf32> to vector<16x32xf32>
    %10 = arith.mulf %9, %9 : vector<16x32xf32>
    %cst = arith.constant dense<0.000000e+00> : vector<16xf32>
    %11 = vector.multi_reduction <add>, %10, %cst [1] : vector<16x32xf32> to vector<16xf32>
    %12 = vector.shape_cast %11 : vector<16xf32> to vector<16x1xf32>
    %cst_11 = arith.constant 3.200000e+01 : f32
    %13 = vector.broadcast %cst_11 : f32 to vector<16x1xf32>
    %14 = arith.divf %12, %13 : vector<16x1xf32>
    %cst_12 = arith.constant 9.99999997E-7 : f32
    %15 = vector.broadcast %cst_12 : f32 to vector<16x1xf32>
    %16 = arith.addf %14, %15 : vector<16x1xf32>
    %17 = math.rsqrt %16 : vector<16x1xf32>
    %18 = vector.broadcast %17 : vector<16x1xf32> to vector<16x32xf32>
    %19 = arith.mulf %9, %18 : vector<16x32xf32>
    %20 = arith.truncf %19 : vector<16x32xf32> to vector<16x32xbf16>
    %c0_13 = arith.constant 0 : index
    %c0_14 = arith.constant 0 : index
    %21 = vector.load %arg2[%c0_13, %c0_14] : memref<32x192xbf16, #tpu.memory_space<vmem>>, vector<32x192xbf16>
    %cst_15 = arith.constant dense<0.000000e+00> : vector<16x192xf32>
    %22 = tpu.matmul %20, %21, %cst_15 {dimension_numbers = #tpu.dot_dimension_numbers<[1], [0], [0], [1], [0, 0, 1, 1], [], []>} : vector<16x32xbf16>, vector<32x192xbf16>, vector<16x192xf32> -> vector<16x192xf32>
    %23 = arith.negf %22 : vector<16x192xf32>
    %24 = math.exp %23 : vector<16x192xf32>
    %cst_16 = arith.constant 1.000000e+00 : f32
    %25 = vector.broadcast %cst_16 : f32 to vector<16x192xf32>
    %26 = arith.addf %25, %24 : vector<16x192xf32>
    %27 = arith.divf %25, %26 : vector<16x192xf32>
    %28 = arith.mulf %22, %27 : vector<16x192xf32>
    %29 = vector.extract_strided_slice %28 {offsets = [0, 0], sizes = [16, 64], strides = [1, 1]} : vector<16x192xf32> to vector<16x64xf32>
    %30 = vector.extract_strided_slice %28 {offsets = [0, 64], sizes = [16, 64], strides = [1, 1]} : vector<16x192xf32> to vector<16x64xf32>
    %31 = vector.extract_strided_slice %28 {offsets = [0, 128], sizes = [16, 64], strides = [1, 1]} : vector<16x192xf32> to vector<16x64xf32>
    %32 = vector.extract_strided_slice %29 {offsets = [0, 32], sizes = [16, 32], strides = [1, 1]} : vector<16x64xf32> to vector<16x32xf32>
    %cst_17 = arith.constant 0.353553385 : f32
    %33 = vector.broadcast %cst_17 : f32 to vector<16x32xf32>
    %34 = arith.mulf %32, %33 : vector<16x32xf32>
    %35 = arith.mulf %29, %1 : vector<16x64xf32>
    %cst_18 = arith.constant dense<0.000000e+00> : vector<16x64xf32>
    %36 = tpu.matmul %29, %3, %cst_18 {dimension_numbers = #tpu.dot_dimension_numbers<[1], [0], [0], [1], [0, 0, 1, 1], [], []>} : vector<16x64xf32>, vector<64x64xf32>, vector<16x64xf32> -> vector<16x64xf32>
    %37 = arith.mulf %36, %0 : vector<16x64xf32>
    %38 = arith.addf %35, %37 : vector<16x64xf32>
    %39 = vector.extract_strided_slice %38 {offsets = [0, 0], sizes = [16, 32], strides = [1, 1]} : vector<16x64xf32> to vector<16x32xf32>
    %40 = vector.extract_strided_slice %38 {offsets = [0, 32], sizes = [16, 32], strides = [1, 1]} : vector<16x64xf32> to vector<16x32xf32>
    %41 = tpu.concatenate %40, %40, %40, %40 in 0 : vector<16x32xf32>, vector<16x32xf32>, vector<16x32xf32>, vector<16x32xf32> -> vector<64x32xf32>
    %42 = arith.mulf %41, %4 : vector<64x32xf32>
    %43 = tpu.concatenate %30, %30, %30, %30 in 0 : vector<16x64xf32>, vector<16x64xf32>, vector<16x64xf32>, vector<16x64xf32> -> vector<64x64xf32>
    %44 = arith.mulf %43, %5 : vector<64x64xf32>
    %cst_19 = arith.constant dense<0.000000e+00> : vector<16x64xf32>
    %45 = tpu.matmul %39, %42, %cst_19 {dimension_numbers = #tpu.dot_dimension_numbers<[1], [1], [0], [0], [0, 0, 1, 0], [], []>} : vector<16x32xf32>, vector<64x32xf32>, vector<16x64xf32> -> vector<16x64xf32>
    %46 = arith.mulf %45, %2 : vector<16x64xf32>
    %47 = math.absf %46 : vector<16x64xf32>
    %cst_20 = arith.constant dense<0.000000e+00> : vector<16x64xf32>
    %48 = tpu.matmul %47, %6, %cst_20 {dimension_numbers = #tpu.dot_dimension_numbers<[1], [0], [0], [1], [0, 0, 1, 1], [], []>} : vector<16x64xf32>, vector<64x64xf32>, vector<16x64xf32> -> vector<16x64xf32>
    %cst_21 = arith.constant 1.000000e+00 : f32
    %cst_22 = arith.constant 5.000000e+04 : f32
    %49 = vector.broadcast %cst_21 : f32 to vector<16x64xf32>
    %50 = arith.maximumf %49, %48 : vector<16x64xf32>
    %51 = vector.broadcast %cst_22 : f32 to vector<16x64xf32>
    %52 = arith.minimumf %51, %50 : vector<16x64xf32>
    %53 = tpu.reciprocal %52 {approx = true} : vector<16x64xf32> -> vector<16x64xf32>
    %54 = arith.mulf %46, %53 : vector<16x64xf32>
    %cst_23 = arith.constant dense<0.000000e+00> : vector<16x64xf32>
    %55 = tpu.matmul %54, %44, %cst_23 {dimension_numbers = #tpu.dot_dimension_numbers<[1], [0], [0], [1], [0, 0, 1, 1], [], []>} : vector<16x64xf32>, vector<64x64xf32>, vector<16x64xf32> -> vector<16x64xf32>
    %56 = arith.mulf %55, %55 : vector<16x64xf32>
    %cst_24 = arith.constant dense<0.000000e+00> : vector<16x64xf32>
    %57 = tpu.matmul %56, %7, %cst_24 {dimension_numbers = #tpu.dot_dimension_numbers<[1], [0], [0], [1], [0, 0, 1, 1], [], []>} : vector<16x64xf32>, vector<64x64xf32>, vector<16x64xf32> -> vector<16x64xf32>
    %cst_25 = arith.constant 6.250000e-02 : f32
    %58 = vector.broadcast %cst_25 : f32 to vector<16x64xf32>
    %59 = arith.mulf %57, %58 : vector<16x64xf32>
    %cst_26 = arith.constant 9.99999997E-7 : f32
    %60 = vector.broadcast %cst_26 : f32 to vector<16x64xf32>
    %61 = arith.addf %59, %60 : vector<16x64xf32>
    %62 = math.rsqrt %61 : vector<16x64xf32>
    %63 = arith.mulf %55, %62 : vector<16x64xf32>
    %64 = arith.mulf %63, %31 : vector<16x64xf32>
    %65 = arith.truncf %64 : vector<16x64xf32> to vector<16x64xbf16>
    %c0_27 = arith.constant 0 : index
    %c0_28 = arith.constant 0 : index
    %66 = vector.load %arg3[%c0_27, %c0_28] : memref<64x32xbf16, #tpu.memory_space<vmem>>, vector<64x32xbf16>
    %cst_29 = arith.constant dense<0.000000e+00> : vector<16x32xf32>
    %67 = tpu.matmul %65, %66, %cst_29 {dimension_numbers = #tpu.dot_dimension_numbers<[1], [0], [0], [1], [0, 0, 1, 1], [], []>} : vector<16x64xbf16>, vector<64x32xbf16>, vector<16x32xf32> -> vector<16x32xf32>
    %68 = arith.addf %9, %67 : vector<16x32xf32>
    %69 = tpu.concatenate %68, %34, %30 in 1 : vector<16x32xf32>, vector<16x32xf32>, vector<16x64xf32> -> vector<16x128xf32>
    %70 = vector.shape_cast %69 : vector<16x128xf32> to vector<2x8x128xf32>
    %c0_30 = arith.constant 0 : index
    %c0_31 = arith.constant 0 : index
    %c0_32 = arith.constant 0 : index
    %71 = vector.load %arg5[%c0_30, %c0_31, %c0_32] : memref<2x8x128xf32, #tpu.memory_space<vmem>>, vector<2x8x128xf32>
    tpu.vector_store %arg5[%c0_30, %c0_31, %c0_32], %70 {strides = array<i32>} : memref<2x8x128xf32, #tpu.memory_space<vmem>>, vector<2x8x128xf32>,
    return
  }
  func.func @transform_0(%arg0: i32) -> (i32, i32, i32) {
    %c0_i32 = arith.constant 0 : i32
    %c0_i32_0 = arith.constant 0 : i32
    %c0_i32_1 = arith.constant 0 : i32
    return %arg0, %c0_i32, %c0_i32_0 : i32, i32, i32
  }
  func.func @transform_1(%arg0: i32) -> (i32, i32) {
    %c0_i32 = arith.constant 0 : i32
    %c0_i32_0 = arith.constant 0 : i32
    %c0_i32_1 = arith.constant 0 : i32
    return %c0_i32, %c0_i32_0 : i32, i32
  }
  func.func @transform_2(%arg0: i32) -> (i32, i32) {
    %c0_i32 = arith.constant 0 : i32
    %c0_i32_0 = arith.constant 0 : i32
    %c0_i32_1 = arith.constant 0 : i32
    return %c0_i32, %c0_i32_0 : i32, i32
  }
  func.func @transform_3(%arg0: i32) -> (i32, i32) {
    %c0_i32 = arith.constant 0 : i32
    %c0_i32_0 = arith.constant 0 : i32
    %c0_i32_1 = arith.constant 0 : i32
    return %c0_i32, %c0_i32_0 : i32, i32
  }
  func.func @transform_4(%arg0: i32) -> (i32, i32, i32) {
    %c0_i32 = arith.constant 0 : i32
    %c0_i32_0 = arith.constant 0 : i32
    %c0_i32_1 = arith.constant 0 : i32
    return %arg0, %c0_i32, %c0_i32_0 : i32, i32, i32
  }
}

</mosaic_0001>

<bundles_post_ra>
// kernel: tpu_custom_call.1
= control target key start
LH: loop header
LB: loop body
LE: loop exit
PB: predicated region body
PF: predicated region fallthrough
CT: control target
= control target key end

     0   :  { %vm69_vm0 = vcmask 261120   ;;  %s1149_s0 = inlined_call_operand.vmem [shape: f32[2,8,32], index: 0, kind: input, shape index: {}]   ;;  %s1150_s1 = inlined_call_operand.vmem [shape: bf16[32,192], index: 1, kind: input, shape index: {}]   ;;  %s1151_s2 = inlined_call_operand.vmem [shape: bf16[64,32], index: 2, kind: input, shape index: {}]   ;;  %s1152_s3 = inlined_call_operand.vmem [shape: f32[368,64], index: 3, kind: input, shape index: {}]   ;;  %s1153_s4 = inlined_call_operand.hbm [shape: f32[2,8,128], index: 4, kind: output, shape index: {}]  }
   0x1   :  { %v852_v0 = vld [vmem:[%s1149_s0] sm:$0xff] }
   0x2   :  { %9 = vsyncpa [#allocation3], 0  ;;  %v67_v1 = vmul.f32 %v852_v0, %v852_v0  ;;  %v859_v2 = vld [vmem:[%s1149_s0 + $0x8] sm:$0xff]  ;;  %v817_v6 = vmov 32.0   ;;  %v679_v11 = vld [vmem:[%s1150_s1 + $0x10] sm:$0xf] }
   0x3   :  { %v68_v4 = vmul.f32 %v859_v2, %v859_v2  ;;  %761 = vrcp.f32 %v817_v6  ;;  %v729_v12 = vld [vmem:[%s1150_s1 + $0x14] sm:$0xf0]  ;;  %v728_v13 = vld [vmem:[%s1150_s1 + $0x14] sm:$0xf]  ;;  %v681_v16 = vld [vmem:[%s1150_s1 + $0x18] sm:$0xf0] }
   0x4   :  { %v70_v3 = vsel %vm69_vm0, %v67_v1, 0.0  ;;  %v680_v15 = vor.u32 %v729_v12, %v679_v11  ;;  %v684_v17 = vor.u32 %v728_v13, %v681_v16  ;;  %v671_v18 = vld [vmem:[%s1150_s1] sm:$0xf]  ;;  %v727_v19 = vld [vmem:[%s1150_s1 + $0x4] sm:$0xf0]  ;;  %v30_v50 = vld [vmem:[%s1152_s3 + $0x58] sm:$0xff] }
   0x5   :  { %71 = vadd.xlane.f32.xlu0 %v70_v3  ;;  %v73_v5 = vsel %vm69_vm0, %v68_v4, 0.0  ;;  %v726_v20 = vld [vmem:[%s1150_s1 + $0x4] sm:$0xf]  ;;  %v672_v21 = vor.u32 %v727_v19, %v671_v18  ;;  %v673_v22 = vld [vmem:[%s1150_s1 + $0x8] sm:$0xf0]  ;;  %v29_v51 = vld [vmem:[%s1152_s3 + $0x50] sm:$0xff] }
   0x6   :  { %143 = vmatpush.bf16.msra.mxu0 %v680_v15  ;;  %157 = vmatpush.bf16.msra.mxu1 %v684_v17  ;;  %v676_v24 = vor.u32 %v726_v20, %v673_v22  ;;  %v32_v48 = vld [vmem:[%s1152_s3 + $0x68] sm:$0xff]  ;;  %v31_v49 = vld [vmem:[%s1152_s3 + $0x60] sm:$0xff]  ;;  %v26_v55 = vld [vmem:[%s1152_s3 + $0x38] sm:$0xff]  ;;  %s818_s22 = smov 32   ;;  %vm249_vm12 = vcmask 523264   ;;  %s819_s20 = smov 96  }
   0x7   :  { %264 = vmatpush.msra.mxu2 %v32_v48  ;;  %v28_v52 = vld [vmem:[%s1152_s3 + $0x48] sm:$0xff]  ;;  %v27_v53 = vld [vmem:[%s1152_s3 + $0x40] sm:$0xff]  ;;  %v25_v58 = vld [vmem:[%s1152_s3 + $0x30] sm:$0xff]  ;;  %s657_s27 = sshll.u32 %s1153_s4, 4  ;;  %s822_s28 = smov 128   ;;  %s658_s27 = int_to_ptr.hbm [resolvable:$true] %s657_s27 }
   0x8   :  { %v40_v54 = vld [vmem:[%s1152_s3 + $0xa8] sm:$0xff]  ;;  %v39_v59 = vld [vmem:[%s1152_s3 + $0xa0] sm:$0xff]  ;;  %v38_v1 = vld [vmem:[%s1152_s3 + $0x98] sm:$0xff]  ;;  %s823_s29 = smov 8  }
   0x9   :  { %v762_v7 = vpop.eup %761  ;;  %265 = vmatpush.msra.mxu2 %v31_v49  ;;  %305 = vrot.lane.b32.xlu1 %v40_v54, %s818_s22  ;;  %v36_v61 = vld [vmem:[%s1152_s3 + $0x88] sm:$0xff]  ;;  %v35_v4 = vld [vmem:[%s1152_s3 + $0x80] sm:$0xff]  ;;  %v33_v11 = vld [vmem:[%s1152_s3 + $0x70] sm:$0xff] }
   0xa   :  { %v77_v8 = vmul.f32 32.0, %v762_v7  ;;  %vm81_vm1 = vweird.f32 %v762_v7  ;;  %144 = vmatpush.bf16.msra.mxu0 %v672_v21  ;;  %158 = vmatpush.bf16.msra.mxu1 %v676_v24  ;;  %v34_v15 = vld [vmem:[%s1152_s3 + $0x78] sm:$0xff] }
   0xb   :  { %266 = vmatpush.msra.mxu2 %v30_v50  ;;  %301 = vrot.lane.b32.xlu2 %v38_v1, %s818_s22  ;;  %v43_v1 = vld [vmem:[%s1152_s3 + $0xc0] sm:$0xff] }
   0xc   :  { %v78_v9 = vsub.f32 1.0, %v77_v8 }
   0xd   :  { %74 = vadd.xlane.f32.xlu0 %v73_v5  ;;  %267 = vmatpush.msra.mxu2 %v29_v51  ;;  %v37_v5 = vld [vmem:[%s1152_s3 + $0x90] sm:$0xff] }
   0xe   :  { %v79_v10 = vmul.f32 %v762_v7, %v78_v9 }
   0xf   :  { %268 = vmatpush.msra.mxu2 %v28_v52 }
  0x10   :  { %v80_v14 = vadd.f32 %v762_v7, %v79_v10 }
  0x11   :  { %269 = vmatpush.msra.mxu2 %v27_v53  ;;  %303 = vrot.lane.b32.xlu1 %v39_v59, %s818_s22  ;;  %v47_v59 = vld [vmem:[%s1152_s3 + $0xe0] sm:$0xff] }
  0x12   :  { %v82_v23 = vsel %vm81_vm1, %v762_v7, %v80_v14 }
  0x13   :  { %270 = vmatpush.msra.mxu2 %v26_v55  ;;  %299 = vrot.lane.b32.xlu2 %v37_v5, %s818_s22  ;;  %v42_v5 = vld [vmem:[%s1152_s3 + $0xb8] sm:$0xff] }
  0x15   :  { %271 = vmatpush.msra.mxu2 %v25_v58 }
  0x19   :  { %295 = vrot.lane.b32.xlu1 %v35_v4, %s818_s22  ;;  %v45_v4 = vld [vmem:[%s1152_s3 + $0xd0] sm:$0xff] }
  0x1b   :  { %293 = vrot.lane.b32.xlu2 %v34_v15, %s818_s22 }
  0x21   :  { %297 = vrot.lane.b32.xlu0 %v36_v61, %s818_s22  ;;  %291 = vrot.lane.b32.xlu1 %v33_v11, %s818_s22  ;;  %s820_s22 = smov 64   ;;  %v44_v61 = vld [vmem:[%s1152_s3 + $0xc8] sm:$0xff] }
  0x78   :  { %v72_v25 = vpop.xlane.xlu0 %71 }
  0x79   :  { %v83_v26 = vmul.f32 %v82_v23, %v72_v25 }
  0x7b   :  { %v85_v27 = vadd.f32 1e-06, %v83_v26 }
  0x7d   :  { %763 = vrsqrt.f32 %v85_v27  ;;  %vm93_vm3 = vweird.f32 %v85_v27 }
  0x80   :  { %v75_v28 = vpop.xlane.xlu0 %74 }
  0x81   :  { %v84_v29 = vmul.f32 %v82_v23, %v75_v28 }
  0x83   :  { %v764_v30 = vpop.eup %763  ;;  %v86_v31 = vadd.f32 1e-06, %v84_v29 }
  0x84   :  { %v88_v32 = vmul.f32 %v764_v30, %v85_v27  ;;  %vm94_vm2 = vweird.f32 %v764_v30 }
  0x85   :  { %765 = vrsqrt.f32 %v86_v31  ;;  %vm95_vm5 = vmor %vm93_vm3, %vm94_vm2  ;;  %vm103_vm6 = vweird.f32 %v86_v31 }
  0x86   :  { %v89_v33 = vmul.f32 %v764_v30, %v88_v32  ;;  %v306_v32 = vpop.permute.xlu1 %305 }
  0x88   :  { %v90_v34 = vmul.f32 0.5, %v89_v33  ;;  %v302_v33 = vpop.permute.xlu2 %301 }
  0x8a   :  { %v91_v36 = vsub.f32 1.5, %v90_v34 }
  0x8b   :  { %v766_v35 = vpop.eup %765 }
  0x8c   :  { %v98_v37 = vmul.f32 %v766_v35, %v86_v31  ;;  %v92_v39 = vmul.f32 %v764_v30, %v91_v36  ;;  %vm104_vm4 = vweird.f32 %v766_v35  ;;  %v21_v36 = vld [vmem:[%s1152_s3 + $0x10] sm:$0xff] }
  0x8d   :  { %vm105_vm7 = vmor %vm103_vm6, %vm104_vm4 }
  0x8e   :  { %v99_v38 = vmul.f32 %v766_v35, %v98_v37  ;;  %v96_v43 = vsel %vm95_vm5, %v764_v30, %v92_v39  ;;  %v304_v34 = vpop.permute.xlu1 %303 }
  0x8f   :  { %v107_v45 = vmul.f32 %v96_v43, %v852_v0 }
  0x90   :  { %v100_v40 = vmul.f32 0.5, %v99_v38  ;;  %v300_v38 = vpop.permute.xlu2 %299 }
  0x92   :  { %v101_v41 = vsub.f32 1.5, %v100_v40 }
  0x93   :  { %v298_v50 = vpop.permute.xlu0 %297 }
  0x94   :  { %v102_v42 = vmul.f32 %v766_v35, %v101_v41 }
  0x96   :  { %v106_v44 = vsel %vm105_vm7, %v766_v35, %v102_v42  ;;  %v19_v35 = vld [vmem:[%s1152_s3] sm:$0xff] }
  0x97   :  { %v108_v46 = vmul.f32 %v106_v44, %v859_v2  ;;  %v20_v44 = vld [vmem:[%s1152_s3 + $0x8] sm:$0xff] }
  0x98   :  { %v294_v51 = vpop.permute.xlu2 %293 }
  0x99   :  { %v109_v47 = vpack.c.bf16 %v108_v46, %v107_v45  ;;  %v22_v45 = vld [vmem:[%s1152_s3 + $0x18] sm:$0xff]  ;;  %v296_v46 = vpop.permute.xlu1 %295 }
  0x9b   :  { %685 = vmatmul.msk.bf16.vlgmr.msra.gmra.mxu0 %vm69_vm0, %v109_v47  ;;  %686 = vmatmul.msk.bf16.vlgmr.msra.gmra.mxu1 %vm69_vm0, %v109_v47 }
 0x118   :  { %v146_v56 = vpop.f32.mrf.mxu0 }
 0x119   :  { %v687_v57 = vmul.f32 -1.442695, %v146_v56 }
 0x11b   :  { %767 = vpow2.f32 %v687_v57 }
 0x120   :  { %v148_v60 = vpop.f32.mrf.mxu0 }
 0x121   :  { %v768_v62 = vpop.eup %767  ;;  %v689_v63 = vmul.f32 -1.442695, %v148_v60 }
 0x122   :  { %v177_v3 = vadd.f32 1.0, %v768_v62 }
 0x123   :  { %769 = vpow2.f32 %v689_v63  ;;  %v48_v63 = vld [vmem:[%s1152_s3 + $0xe8] sm:$0xff] }
 0x124   :  { %771 = vrcp.f32 %v177_v3  ;;  %v192_v12 = vand.u32 2147483648, %v177_v3  ;;  %v190_v14 = vand.u32 2147483647, %v177_v3  ;;  %vm186_vm9 = vweird.f32 %v177_v3 }
 0x126   :  { %v193_v18 = vor.u32 1.1754944e-38, %v192_v12  ;;  %vm191_vm11 = vcmp.eq.f32.partialorder %v190_v14, 8.507059e+37 }
 0x129   :  { %v770_v6 = vpop.eup %769 }
 0x12a   :  { %v772_v7 = vpop.eup %771  ;;  %v179_v8 = vadd.f32 1.0, %v770_v6 }
 0x12b   :  { %v182_v9 = vmul.f32 %v772_v7, %v177_v3  ;;  %vm187_vm8 = vweird.f32 %v772_v7  ;;  %v41_v3 = vld [vmem:[%s1152_s3 + $0xb0] sm:$0xff] }
 0x12c   :  { %773 = vrcp.f32 %v179_v8  ;;  %vm188_vm10 = vmor %vm186_vm9, %vm187_vm8  ;;  %v222_v24 = vand.u32 2147483648, %v179_v8  ;;  %v220_v26 = vand.u32 2147483647, %v179_v8  ;;  %vm216_vm14 = vweird.f32 %v179_v8 }
 0x12d   :  { %v183_v10 = vsub.f32 1.0, %v182_v9 }
 0x12e   :  { %v223_v28 = vor.u32 1.1754944e-38, %v222_v24  ;;  %vm221_vm1 = vcmp.eq.f32.partialorder %v220_v26, 8.507059e+37 }
 0x12f   :  { %v184_v13 = vmul.f32 %v772_v7, %v183_v10 }
 0x131   :  { %v185_v16 = vadd.f32 %v772_v7, %v184_v13 }
 0x132   :  { %v774_v17 = vpop.eup %773 }
 0x133   :  { %v189_v19 = vsel %vm188_vm10, %v772_v7, %v185_v16  ;;  %v212_v20 = vmul.f32 %v774_v17, %v179_v8  ;;  %vm217_vm13 = vweird.f32 %v774_v17 }
 0x134   :  { %v194_v21 = vsel %vm191_vm11, %v193_v18, %v189_v19  ;;  %vm218_vm15 = vmor %vm216_vm14, %vm217_vm13 }
 0x135   :  { %v949_v22 = vmul.f32 %v194_v21, %v146_v56  ;;  %v213_v23 = vsub.f32 1.0, %v212_v20  ;;  %v292_v56 = vpop.permute.xlu1 %291 }
 0x137   :  { %v214_v25 = vmul.f32 %v774_v17, %v213_v23  ;;  %691 = vmatmul.msk.f32.vlgmr.msra.gmra.mxu2 %vm249_vm12, %v949_v22  ;;  %v247_v39 = vmul.f32 %v949_v22, %v21_v36  ;;  %v56_v36 = vld [vmem:[%s1152_s3 + $0x128] sm:$0xff] }
 0x138   :  { %450 = vmatpush.msrb.mxu0 %v56_v36 }
 0x139   :  { %v215_v27 = vadd.f32 %v774_v17, %v214_v25 }
 0x13b   :  { %v219_v29 = vsel %vm218_vm15, %v774_v17, %v215_v27 }
 0x13c   :  { %v224_v30 = vsel %vm221_vm1, %v223_v28, %v219_v29 }
 0x13d   :  { %v953_v31 = vmul.f32 %v224_v30, %v148_v60  ;;  %v46_v60 = vld [vmem:[%s1152_s3 + $0xd8] sm:$0xff] }
 0x13f   :  { %692 = vmatmul.msk.f32.gmra.mxu2 %vm249_vm12, %v953_v31  ;;  %v248_v48 = vmul.f32 %v953_v31, %v22_v45 }
 0x1ba   :  { %v273_v37 = vpop.f32.mrf.mxu2 }
 0x1bb   :  { %v279_v40 = vmul.f32 %v273_v37, %v19_v35  ;;  %v55_v37 = vld [vmem:[%s1152_s3 + $0x120] sm:$0xff] }
 0x1bc   :  { %451 = vmatpush.msrb.mxu0 %v55_v37  ;;  %v731_v37 = vld [vmem:[%s1151_s2 + $0x8] sm:$0xff] }
 0x1bd   :  { %v964_v41 = vadd.f32 %v279_v40, %v247_v39  ;;  %v53_v39 = vld [vmem:[%s1152_s3 + $0x110] sm:$0xff]  ;;  %v52_v40 = vld [vmem:[%s1152_s3 + $0x108] sm:$0xff] }
 0x1bf   :  { %v319_v42 = vmul.f32 %v300_v38, %v964_v41  ;;  %v321_v43 = vmul.f32 %v304_v34, %v964_v41  ;;  %v315_v57 = vmul.f32 %v292_v56, %v964_v41  ;;  %v317_v62 = vmul.f32 %v296_v46, %v964_v41  ;;  %v54_v38 = vld [vmem:[%s1152_s3 + $0x118] sm:$0xff] }
 0x1c0   :  { %452 = vmatpush.msrb.mxu0 %v54_v38 }
 0x1c1   :  { %383 = vrot.lane.b32.xlu1 %v321_v43, %s819_s20  ;;  %379 = vrot.lane.b32.xlu0 %v319_v42, %s819_s20  ;;  %v50_v42 = vld [vmem:[%s1152_s3 + $0xf8] sm:$0xff]  ;;  %v49_v43 = vld [vmem:[%s1152_s3 + $0xf0] sm:$0xff] }
 0x1c2   :  { %v276_v47 = vpop.f32.mrf.mxu2  ;;  %453 = vmatpush.msrb.mxu0 %v53_v39  ;;  %v730_v39 = vld [vmem:[%s1151_s2] sm:$0xff] }
 0x1c3   :  { %v280_v49 = vmul.f32 %v276_v47, %v20_v44 }
 0x1c4   :  { %454 = vmatpush.msrb.mxu0 %v52_v40 }
 0x1c5   :  { %v975_v52 = vadd.f32 %v280_v49, %v248_v48 }
 0x1c7   :  { %v318_v53 = vmul.f32 %v298_v50, %v975_v52  ;;  %v316_v54 = vmul.f32 %v294_v51, %v975_v52  ;;  %v322_v55 = vmul.f32 %v306_v32, %v975_v52  ;;  %v320_v58 = vmul.f32 %v302_v33, %v975_v52 }
 0x1c9   :  { %385 = vrot.lane.b32.xlu2 %v322_v55, %s819_s20  ;;  %377 = vrot.lane.b32.xlu1 %v318_v53, %s819_s20  ;;  %v23_v55 = vld [vmem:[%s1152_s3 + $0x20] sm:$0xff] }
 0x1ca   :  { %373 = vrot.lane.b32.xlu0 %v316_v54, %s819_s20 }
 0x1d1   :  { %381 = vrot.lane.b32.xlu2 %v320_v58, %s819_s20  ;;  %371 = vrot.lane.b32.xlu1 %v315_v57, %s819_s20 }
 0x1d2   :  { %343 = vrot.lane.b32.xlu0 %v47_v59, %s820_s22 }
 0x1d9   :  { %375 = vrot.lane.b32.xlu2 %v317_v62, %s819_s20  ;;  %341 = vrot.lane.b32.xlu1 %v46_v60, %s820_s22  ;;  %v24_v60 = vld [vmem:[%s1152_s3 + $0x28] sm:$0xff] }
 0x1da   :  { %337 = vrot.lane.b32.xlu0 %v44_v61, %s820_s22 }
 0x1e1   :  { %345 = vrot.lane.b32.xlu2 %v48_v63, %s820_s22  ;;  %335 = vrot.lane.b32.xlu1 %v43_v1, %s820_s22  ;;  %v64_v1 = vld [vmem:[%s1152_s3 + $0x168] sm:$0xff] }
 0x1e2   :  { %331 = vrot.lane.b32.xlu0 %v41_v3, %s820_s22  ;;  %v63_v3 = vld [vmem:[%s1152_s3 + $0x160] sm:$0xff]  ;;  %550 = vmatpush.msrb.mxu2 %v64_v1 }
 0x1e4   :  { %551 = vmatpush.msrb.mxu2 %v63_v3 }
 0x1e9   :  { %339 = vrot.lane.b32.xlu2 %v45_v4, %s820_s22  ;;  %v62_v4 = vld [vmem:[%s1152_s3 + $0x158] sm:$0xff] }
 0x1ea   :  { %552 = vmatpush.msrb.mxu2 %v62_v4 }
 0x1f1   :  { %333 = vrot.lane.b32.xlu2 %v42_v5, %s820_s22  ;;  %v61_v5 = vld [vmem:[%s1152_s3 + $0x150] sm:$0xff] }
 0x1f2   :  { %553 = vmatpush.msrb.mxu2 %v61_v5 }
 0x223   :  { %v386_v6 = vpop.permute.xlu2 %385 }
 0x224   :  { %693 = vmatpush.xpose.msk.msra.mxu3 %vm69_vm0, %v386_v6  ;;  %v60_v6 = vld [vmem:[%s1152_s3 + $0x148] sm:$0xff] }
 0x225   :  { %554 = vmatpush.msrb.mxu2 %v60_v6 }
 0x22b   :  { %v382_v7 = vpop.permute.xlu2 %381 }
 0x233   :  { %v384_v8 = vpop.permute.xlu1 %383  ;;  %v380_v9 = vpop.permute.xlu0 %379 }
 0x234   :  { %v376_v10 = vpop.permute.xlu2 %375  ;;  %694 = vmatpush.xpose.msk.msra.mxu3 %vm69_vm0, %v384_v8 }
 0x238   :  { %695 = vmatpush.xpose.msk.msra.mxu3 %vm69_vm0, %v382_v7  ;;  %v59_v7 = vld [vmem:[%s1152_s3 + $0x140] sm:$0xff] }
 0x239   :  { %555 = vmatpush.msrb.mxu2 %v59_v7 }
 0x23b   :  { %v378_v11 = vpop.permute.xlu1 %377 }
 0x23c   :  { %v374_v12 = vpop.permute.xlu0 %373  ;;  %696 = vmatpush.xpose.msk.msra.mxu3 %vm69_vm0, %v380_v9  ;;  %v346_v13 = vpop.permute.xlu2 %345  ;;  %v58_v9 = vld [vmem:[%s1152_s3 + $0x138] sm:$0xff] }
 0x23d   :  { %v362_v16 = vmul.f32 %v346_v13, %v953_v31  ;;  %556 = vmatpush.msrb.mxu2 %v58_v9 }
 0x240   :  { %697 = vmatpush.xpose.msk.msra.mxu3 %vm69_vm0, %v378_v11 }
 0x243   :  { %v372_v14 = vpop.permute.xlu1 %371 }
 0x244   :  { %v344_v15 = vpop.permute.xlu0 %343  ;;  %698 = vmatpush.xpose.msk.msra.mxu3 %vm69_vm0, %v376_v10  ;;  %v340_v19 = vpop.permute.xlu2 %339 }
 0x245   :  { %v361_v17 = vmul.f32 %v344_v15, %v949_v22  ;;  %v359_v21 = vmul.f32 %v340_v19, %v949_v22  ;;  %v57_v19 = vld [vmem:[%s1152_s3 + $0x130] sm:$0xff] }
 0x246   :  { %557 = vmatpush.msrb.mxu2 %v57_v19 }
 0x247   :  { %v741_v18 = vpack.i.bf16 %v361_v17, %v362_v16 }
 0x248   :  { %699 = vmatpush.xpose.msk.msra.mxu3 %vm69_vm0, %v374_v12 }
 0x249   :  { %742 = vrot.lane.b32.xlu1 %v741_v18, %s820_s22 }
 0x24b   :  { %v342_v20 = vpop.permute.xlu1 %341 }
 0x24c   :  { %v338_v23 = vpop.permute.xlu0 %337  ;;  %v360_v24 = vmul.f32 %v342_v20, %v953_v31  ;;  %700 = vmatpush.xpose.msk.msra.mxu3 %vm69_vm0, %v372_v14  ;;  %v334_v26 = vpop.permute.xlu2 %333 }
 0x24d   :  { %v358_v28 = vmul.f32 %v338_v23, %v953_v31  ;;  %v356_v32 = vmul.f32 %v334_v26, %v953_v31  ;;  %v1097_v20 = vpop.f32.mrf.mxu1 }
 0x24e   :  { %v746_v25 = vpack.i.bf16 %v359_v21, %v360_v24 }
 0x24f   :  { %701 = vmatmul.msk.f32.vlgmr.msra.gmra.mxu3 %vm69_vm0, %v964_v41  ;;  %v51_v41 = vld [vmem:[%s1152_s3 + $0x100] sm:$0xff] }
 0x250   :  { %747 = vrot.lane.b32.xlu2 %v746_v25, %s820_s22  ;;  %455 = vmatpush.msrb.mxu0 %v51_v41 }
 0x252   :  { %456 = vmatpush.msrb.mxu0 %v50_v42 }
 0x253   :  { %v336_v27 = vpop.permute.xlu1 %335 }
 0x254   :  { %v332_v29 = vpop.permute.xlu0 %331  ;;  %v357_v30 = vmul.f32 %v336_v27, %v949_v22  ;;  %457 = vmatpush.msrb.mxu0 %v49_v43  ;;  %v688_v27 = vmul.f32 -1.442695, %v1097_v20 }
 0x255   :  { %v355_v33 = vmul.f32 %v332_v29, %v949_v22  ;;  %v1099_v21 = vpop.f32.mrf.mxu1 }
 0x256   :  { %v751_v34 = vpack.i.bf16 %v357_v30, %v358_v28  ;;  %v690_v28 = vmul.f32 -1.442695, %v1099_v21  ;;  %v733_v30 = vld [vmem:[%s1151_s2 + $0x18] sm:$0xff] }
 0x257   :  { %v756_v35 = vpack.i.bf16 %v355_v33, %v356_v32  ;;  %702 = vmatmul.msk.f32.gmra.mxu3 %vm69_vm0, %v975_v52  ;;  %633 = vmatpush.bf16.msra.mxu0 %v733_v30  ;;  %v245_v30 = vmul.f32 0.35355338, %v949_v22 }
 0x258   :  { %752 = vrot.lane.b32.xlu0 %v751_v34, %s820_s22 }
 0x259   :  { %757 = vrot.lane.b32.xlu1 %v756_v35, %s820_s22  ;;  %v732_v35 = vld [vmem:[%s1151_s2 + $0x10] sm:$0xff]  ;;  %s821_s2 = smov [#allocation2]  }
 0x25a   :  { %s655_s24 = sshll.u32 %s821_s2, 4  ;;  %s656_s24 = int_to_ptr.vmem [resolvable:$true] %s655_s24 }
 0x25b   :  { %634 = vmatpush.bf16.msra.mxu0 %v732_v35 }
 0x25f   :  { %635 = vmatpush.bf16.msra.mxu0 %v731_v37 }
 0x263   :  { %636 = vmatpush.bf16.msra.mxu0 %v730_v39 }
 0x2aa   :  { %v748_v46 = vpop.permute.xlu2 %747 }
 0x2ab   :  { %v749_v48 = vunpack.i.l.bf16 %v748_v46  ;;  %v750_v49 = vunpack.i.h.bf16 %v748_v46 }
 0x2bb   :  { %v743_v44 = vpop.permute.xlu1 %742 }
 0x2bc   :  { %v744_v45 = vunpack.i.l.bf16 %v743_v44  ;;  %v745_v47 = vunpack.i.h.bf16 %v743_v44 }
 0x2be   :  { %519 = vmatpush.msrb.mxu1 %v744_v45 }
 0x2c0   :  { %520 = vmatpush.msrb.mxu1 %v745_v47 }
 0x2c2   :  { %521 = vmatpush.msrb.mxu1 %v749_v48 }
 0x2c4   :  { %522 = vmatpush.msrb.mxu1 %v750_v49 }
 0x2ca   :  { %v753_v50 = vpop.permute.xlu0 %752 }
 0x2cb   :  { %v754_v51 = vunpack.i.l.bf16 %v753_v50  ;;  %v758_v52 = vpop.permute.xlu1 %757  ;;  %v755_v53 = vunpack.i.h.bf16 %v753_v50 }
 0x2cc   :  { %v759_v54 = vunpack.i.l.bf16 %v758_v52  ;;  %v760_v56 = vunpack.i.h.bf16 %v758_v52 }
 0x2cd   :  { %523 = vmatpush.msrb.mxu1 %v754_v51 }
 0x2cf   :  { %524 = vmatpush.msrb.mxu1 %v755_v53 }
 0x2d1   :  { %525 = vmatpush.msrb.mxu1 %v759_v54 }
 0x2d2   :  { %v426_v57 = vpop.f32.mrf.mxu3 }
 0x2d3   :  { %v432_v58 = vmul.f32 %v426_v57, %v23_v55  ;;  %526 = vmatpush.msrb.mxu1 %v760_v56 }
 0x2d5   :  { %v434_v59 = vand.u32 2147483647, %v432_v58 }
 0x2d7   :  { %703 = vmatmul.msk.f32.vlgmr.msrb.gmra.mxu0 %vm249_vm12, %v434_v59 }
 0x2da   :  { %v429_v61 = vpop.f32.mrf.mxu3 }
 0x2db   :  { %v433_v62 = vmul.f32 %v429_v61, %v24_v60 }
 0x2dd   :  { %v435_v63 = vand.u32 2147483647, %v433_v62 }
 0x2df   :  { %704 = vmatmul.msk.f32.gmra.mxu0 %vm249_vm12, %v435_v63 }
 0x354   :  { %v459_v8 = vpop.f32.mrf.mxu0 }
 0x355   :  { %v465_v10 = vmax.f32 %v459_v8, 1.0 }
 0x357   :  { %v467_v11 = vmin.f32 %v465_v10, 50000.0 }
 0x359   :  { %775 = vrcp.f32 %v467_v11 }
 0x35c   :  { %v462_v12 = vpop.f32.mrf.mxu0 }
 0x35d   :  { %v466_v13 = vmax.f32 %v462_v12, 1.0 }
 0x35f   :  { %v776_v14 = vpop.eup %775  ;;  %v468_v15 = vmin.f32 %v466_v13, 50000.0 }
 0x360   :  { %v471_v16 = vmul.f32 %v776_v14, %v432_v58 }
 0x361   :  { %777 = vrcp.f32 %v468_v15 }
 0x362   :  { %705 = vmatmul.msk.f32.vlgmr.msrb.gmra.mxu1 %vm249_vm12, %v471_v16  ;;  %779 = vpow2.f32 %v688_v27 }
 0x363   :  { %781 = vpow2.f32 %v690_v28 }
 0x367   :  { %v778_v17 = vpop.eup %777 }
 0x368   :  { %v472_v18 = vmul.f32 %v778_v17, %v433_v62  ;;  %v780_v29 = vpop.eup %779 }
 0x369   :  { %v782_v32 = vpop.eup %781  ;;  %v178_v33 = vadd.f32 1.0, %v780_v29 }
 0x36a   :  { %706 = vmatmul.msk.f32.gmra.mxu1 %vm249_vm12, %v472_v18  ;;  %v180_v34 = vadd.f32 1.0, %v782_v32 }
 0x36b   :  { %783 = vrcp.f32 %v178_v33  ;;  %vm201_vm2 = vweird.f32 %v178_v33  ;;  %v207_v60 = vand.u32 2147483648, %v178_v33  ;;  %v205_v4 = vand.u32 2147483647, %v178_v33 }
 0x36c   :  { %785 = vrcp.f32 %v180_v34  ;;  %v237_v62 = vand.u32 2147483648, %v180_v34  ;;  %vm231_vm7 = vweird.f32 %v180_v34  ;;  %v235_v5 = vand.u32 2147483647, %v180_v34 }
 0x36d   :  { %v208_v8 = vor.u32 1.1754944e-38, %v207_v60  ;;  %vm206_vm13 = vcmp.eq.f32.partialorder %v205_v4, 8.507059e+37 }
 0x36e   :  { %v238_v10 = vor.u32 1.1754944e-38, %v237_v62  ;;  %vm236_vm14 = vcmp.eq.f32.partialorder %v235_v5, 8.507059e+37 }
 0x371   :  { %v784_v41 = vpop.eup %783 }
 0x372   :  { %v786_v42 = vpop.eup %785  ;;  %v197_v44 = vmul.f32 %v784_v41, %v178_v33  ;;  %vm202_vm3 = vweird.f32 %v784_v41 }
 0x373   :  { %v227_v45 = vmul.f32 %v786_v42, %v180_v34  ;;  %vm232_vm4 = vweird.f32 %v786_v42  ;;  %vm1125_vm6 = vmor %vm201_vm2, %vm202_vm3 }
 0x374   :  { %v198_v50 = vsub.f32 1.0, %v197_v44  ;;  %vm233_vm8 = vmor %vm231_vm7, %vm232_vm4 }
 0x375   :  { %v228_v51 = vsub.f32 1.0, %v227_v45 }
 0x376   :  { %v199_v54 = vmul.f32 %v784_v41, %v198_v50 }
 0x377   :  { %v229_v55 = vmul.f32 %v786_v42, %v228_v51 }
 0x378   :  { %v200_v59 = vadd.f32 %v784_v41, %v199_v54 }
 0x379   :  { %v230_v61 = vadd.f32 %v786_v42, %v229_v55 }
 0x37a   :  { %v204_v7 = vsel %vm1125_vm6, %v784_v41, %v200_v59 }
 0x37b   :  { %v234_v9 = vsel %vm233_vm8, %v786_v42, %v230_v61  ;;  %v209_v13 = vsel %vm206_vm13, %v208_v8, %v204_v7 }
 0x37c   :  { %v239_v14 = vsel %vm236_vm14, %v238_v10, %v234_v9  ;;  %v242_v18 = vmul.f32 %v209_v13, %v1097_v20 }
 0x37d   :  { %v244_v19 = vmul.f32 %v239_v14, %v1099_v21  ;;  %v246_v21 = vmul.f32 0.35355338, %v953_v31 }
 0x3df   :  { %v1101_v23 = vpop.f32.mrf.mxu1 }
 0x3e0   :  { %v534_v24 = vmul.f32 %v1101_v23, %v1101_v23 }
 0x3e2   :  { %707 = vmatmul.msk.f32.vlgmr.msrb.gmra.mxu2 %vm249_vm12, %v534_v24 }
 0x3e7   :  { %v1106_v25 = vpop.f32.mrf.mxu1 }
 0x3e8   :  { %v535_v26 = vmul.f32 %v1106_v25, %v1106_v25 }
 0x3ea   :  { %708 = vmatmul.msk.f32.gmra.mxu2 %vm249_vm12, %v535_v26 }
 0x465   :  { %v559_v36 = vpop.f32.mrf.mxu2 }
 0x466   :  { %v565_v38 = vmul.f32 0.0625, %v559_v36 }
 0x468   :  { %v567_v40 = vadd.f32 1e-06, %v565_v38 }
 0x46a   :  { %787 = vrsqrt.f32 %v567_v40  ;;  %vm575_vm9 = vweird.f32 %v567_v40 }
 0x46d   :  { %v562_v43 = vpop.f32.mrf.mxu2 }
 0x46e   :  { %v566_v46 = vmul.f32 0.0625, %v562_v43 }
 0x470   :  { %v788_v47 = vpop.eup %787  ;;  %v568_v48 = vadd.f32 1e-06, %v566_v46 }
 0x471   :  { %v570_v49 = vmul.f32 %v788_v47, %v567_v40  ;;  %vm576_vm5 = vweird.f32 %v788_v47 }
 0x472   :  { %789 = vrsqrt.f32 %v568_v48  ;;  %vm577_vm10 = vmor %vm575_vm9, %vm576_vm5  ;;  %vm585_vm15 = vweird.f32 %v568_v48 }
 0x473   :  { %v571_v52 = vmul.f32 %v788_v47, %v570_v49 }
 0x475   :  { %v572_v53 = vmul.f32 0.5, %v571_v52 }
 0x477   :  { %v573_v56 = vsub.f32 1.5, %v572_v53 }
 0x478   :  { %v790_v57 = vpop.eup %789 }
 0x479   :  { %v580_v58 = vmul.f32 %v790_v57, %v568_v48  ;;  %v574_v63 = vmul.f32 %v788_v47, %v573_v56  ;;  %vm586_vm11 = vweird.f32 %v790_v57 }
 0x47a   :  { %vm587_vm1 = vmor %vm585_vm15, %vm586_vm11 }
 0x47b   :  { %v581_v1 = vmul.f32 %v790_v57, %v580_v58  ;;  %v578_v11 = vsel %vm577_vm10, %v788_v47, %v574_v63 }
 0x47c   :  { %v589_v16 = vmul.f32 %v578_v11, %v1101_v23 }
 0x47d   :  { %v582_v6 = vmul.f32 0.5, %v581_v1 }
 0x47e   :  { %v591_v26 = vmul.f32 %v589_v16, %v242_v18 }
 0x47f   :  { %v583_v12 = vsub.f32 1.5, %v582_v6 }
 0x481   :  { %v584_v15 = vmul.f32 %v790_v57, %v583_v12 }
 0x483   :  { %v588_v17 = vsel %vm587_vm1, %v790_v57, %v584_v15 }
 0x484   :  { %v590_v24 = vmul.f32 %v588_v17, %v1106_v25 }
 0x486   :  { %v592_v27 = vmul.f32 %v590_v24, %v244_v19 }
 0x488   :  { %v593_v28 = vpack.c.bf16 %v592_v27, %v591_v26 }
 0x48a   :  { %725 = vmatmul.msk.bf16.vlgmr.msra.gmra.mxu0 %vm249_vm12, %v593_v28 }
 0x507   :  { %v638_v29 = vpop.f32.mrf.mxu0 }
 0x508   :  { %v643_v32 = vadd.f32 %v638_v29, %v852_v0 }
 0x50a   :  { %v645_v23 = vsel %vm69_vm0, %v643_v32, %v245_v30 }
 0x50b   :  { %v647_v33 = vsel %vm249_vm12, %v645_v23, %v949_v22 }
 0x50c   :  { %649 = vst [vmem:[#allocation2] sm:$0xff] %v647_v33 }
 0x50f   :  { %v640_v20 = vpop.f32.mrf.mxu0 }
 0x510   :  { %v644_v25 = vadd.f32 %v640_v20, %v859_v2 }
 0x512   :  { %v646_v0 = vsel %vm69_vm0, %v644_v25, %v246_v21 }
 0x513   :  { %v648_v34 = vsel %vm249_vm12, %v646_v0, %v953_v31 }
 0x514   :  { %650 = vst [vmem:[#allocation2 + $0x8] sm:$0xff] %v648_v34 }
 0x515   :  { %663 = dma.vmem_to_hbm [thread:$0]  %s656_s24, 256, %s658_s27, [#allocation3], %s822_s28, %s822_s28, %s823_s29  }
 0x516   :  { %815 = dma.done.wait [#allocation3], 256  }
 0x517   :  { %816 = vsyncadd [#allocation3], 4294967040 }
 0x518   :  { %668 = vsyncpa [#allocation3], 1 }

</bundles_post_ra>
